<compile_context>
chip_gen: v7x
topology: tpu7x:2x2x1
jax: 0.10.0
libtpu: 0.0.40
codegen_flags: <defaults>
</compile_context>

<pallas_src>
import math

import jax
import jax.numpy as jnp
from jax.experimental import pallas as pl
from jax.experimental.pallas import tpu as pltpu

DT = 0.1


def _idm_kernel(params_ref, x_ref, o_ref):
    # params_ref: SMEM (5,) f32 = [s_0, T, a, 1/(2*sqrt(a*b)), 1/v_d]
    # x_ref:      VMEM (4, R, C) f32, rows = [y, v, s, delta_v] for one tile
    # o_ref:      VMEM (R, C) f32
    s_0 = params_ref[0]
    T = params_ref[1]
    a = params_ref[2]
    inv_2sqrt_ab = params_ref[3]
    inv_vd = params_ref[4]

    y = x_ref[0]        # (R, C)
    v = x_ref[1]
    s = x_ref[2]
    delta_v = x_ref[3]

    s_x = s_0 + v * T + (v * delta_v) * inv_2sqrt_ab
    vr = v * inv_vd
    vr2 = vr * vr
    # exact divide (not pl.reciprocal(approx=True)): the ~2e-4 relative error of
    # the approximate EUP reciprocal would risk the 1e-5 tolerance.
    sr = s_x / s
    a_f = a * (1.0 - vr2 * vr2 - sr * sr)
    v_pred = v + a_f * DT
    # NOTE: the reference loop `if v_pred[i] <= 0: v_pred[i] == 0` is a no-op
    # (comparison, not assignment), so nothing is clamped here either.
    o_ref[...] = y + v_pred * DT


def _pick_tile(n):
    """Pick a (R, C) sample tile: R multiple of 8 sublanes, C multiple of 128 lanes."""
    if n >= (1 << 18):
        # 256K samples / grid step. Live VMEM with double buffering:
        # in 2*4*256*1024*4B + out 2*256*1024*4B ~= 10 MiB -> fits the 32 MiB
        # scoped default on v5e/v6e and leaves headroom on v7x's 64 MiB VMEM.
        return 256, 1024
    if n >= (1 << 15):
        # 32K samples / step: still gets DMA/compute pipelining at moderate N.
        return 64, 512
    # Small N: one block, minimal padding.
    c = 128
    rows = pl.cdiv(n, c)
    r = max(8, pl.cdiv(rows, 8) * 8)
    return r, c


def idm_forward(inputs_IDM, his_labels, s_0, T, a, b, v_d):
    """inputs_IDM: (N, 4) float32 [y, v, s, delta_v]. his_labels is unused (matches reference)."""
    del his_labels
    n = inputs_IDM.shape[0]
    r, c = _pick_tile(n)
    blk = r * c
    n_pad = pl.cdiv(n, blk) * blk
    grid_n = n_pad // blk

    # Host-side precompute: kills the in-kernel sqrt and two vector divides.
    params = jnp.array(
        [s_0, T, a, 1.0 / (2.0 * math.sqrt(a * b)), 1.0 / v_d], dtype=jnp.float32
    )

    x = inputs_IDM.astype(jnp.float32)
    # Pad with 1.0 so padded (discarded) lanes stay finite (s=0 would give inf).
    if n_pad != n:
        x = jnp.pad(x, ((0, n_pad - n), (0, 0)), constant_values=1.0)
    # TODO(synk): have the producer emit (4, N) directly; this transpose is an
    # extra HBM pass that costs more than the kernel itself for large N.
    x_t = x.T.reshape(4, n_pad // c, c)   # sample axis -> (sublane rows, lanes)

    out = pl.pallas_call(
        _idm_kernel,
        out_shape=jax.ShapeDtypeStruct((n_pad // c, c), jnp.float32),
        grid_spec=pltpu.PrefetchScalarGridSpec(
            num_scalar_prefetch=0,
            grid=(grid_n,),
            in_specs=[
                pl.BlockSpec(memory_space=pltpu.SMEM),          # params (5,)
                pl.BlockSpec((4, r, c), lambda i: (0, i, 0)),   # sample tile
            ],
            out_specs=pl.BlockSpec((r, c), lambda i: (i, 0)),
        ),
        compiler_params=pltpu.CompilerParams(
            dimension_semantics=("parallel",),
        ),
    )(params, x_t)

    output_IDM = out.reshape(n_pad)[:n].reshape(n, 1, 1)  # matches .unsqueeze(1).unsqueeze(2)
    mk = lambda val: jnp.array([val], dtype=jnp.float32)
    return (output_IDM, mk(s_0), mk(T), mk(a), mk(b), mk(v_d))


def _reference(inputs_IDM, s_0, T, a, b, v_d):
    y = inputs_IDM[:, 0]
    v = inputs_IDM[:, 1]
    s = inputs_IDM[:, 2]
    delta_v = inputs_IDM[:, 3]
    s_x = s_0 + v * T + v * delta_v / (2.0 * jnp.sqrt(jnp.float32(a) * jnp.float32(b)))
    a_f = a * (1.0 - (v / v_d) ** 4 - (s_x / s) ** 2)
    v_pred = v + a_f * DT
    return (y + v_pred * DT).reshape(-1, 1, 1)


def _make_inputs(key, n):
    k1, k2 = jax.random.split(key)
    base = jax.random.uniform(k1, (n, 4), dtype=jnp.float32, minval=0.5, maxval=2.0)
    x = base.at[:, 2].add(5.0)        # gap s in [5.5, 7.0] (no near-zero division)
    x = x.at[:, 1].mul(10.0)          # speed v in [5, 20]
    his = jax.random.uniform(k2, (n, 1), dtype=jnp.float32)  # unused by the model
    return x, his


if __name__ == "__main__":
    # Deterministic parameter values (same as the module's __init__ defaults).
    s_0, T, a, b, v_d = 1.667, 0.504, 0.43, 3.216, 16.775
    key = jax.random.PRNGKey(0)

    # --- small case (N=8): single padded block ---
    N = 8
    inputs_IDM, his_labels = _make_inputs(key, N)
    outs = idm_forward(inputs_IDM, his_labels, s_0, T, a, b, v_d)
    outs = jax.block_until_ready(outs)

    ref = _reference(inputs_IDM, s_0, T, a, b, v_d)
    assert outs[0].shape == (N, 1, 1)
    assert jnp.allclose(outs[0], ref, rtol=1e-5, atol=1e-5)
    # Parameters are echoed back as shape-(1,) float32 tensors. Compare in
    # float32 (1.667 etc. are not exactly representable; the old exact-equality
    # check against the python float was wrong).
    for got, want in zip(outs[1:], (s_0, T, a, b, v_d)):
        assert got.shape == (1,) and got.dtype == jnp.float32
        assert jnp.allclose(got, jnp.float32(want), rtol=0.0, atol=0.0)

    # --- medium case: exercises the multi-step grid + padding path ---
    N2 = 70000  # -> (64, 512) tiles, grid of 3 steps, padded to 98304 samples
    k2 = jax.random.PRNGKey(1)
    inputs2, his2 = _make_inputs(k2, N2)
    outs2 = jax.block_until_ready(idm_forward(inputs2, his2, s_0, T, a, b, v_d))
    ref2 = _reference(inputs2, s_0, T, a, b, v_d)
    assert outs2[0].shape == (N2, 1, 1)
    assert jnp.allclose(outs2[0], ref2, rtol=1e-5, atol=1e-5)

    print("KERNEL_OK")
</pallas_src>

<mosaic_0001>
module attributes {stable_mosaic.version = 11 : i64} {
  func.func @_idm_kernel(%arg0: i32, %arg1: memref<5xf32, #tpu.memory_space<smem>>, %arg2: memref<4x8x128xf32, #tpu.memory_space<vmem>>, %arg3: memref<8x128xf32, #tpu.memory_space<vmem>>) attributes {dimension_semantics = [#tpu.dimension_semantics<parallel>], iteration_bounds = array<i64: 1>, scalar_prefetch = 0 : i64, scratch_operands = 0 : i64, tpu.core_type = #tpu.core_type<tc>, window_params = [{transform_indices = @transform_0, window_bounds = array<i64: 5>}, {transform_indices = @transform_1, window_bounds = array<i64: 4, 8, 128>}, {transform_indices = @transform_2, window_bounds = array<i64: 8, 128>}]} {
    %c0 = arith.constant 0 : index
    %0 = memref.load %arg1[%c0] : memref<5xf32, #tpu.memory_space<smem>>
    %c1 = arith.constant 1 : index
    %1 = memref.load %arg1[%c1] : memref<5xf32, #tpu.memory_space<smem>>
    %c2 = arith.constant 2 : index
    %2 = memref.load %arg1[%c2] : memref<5xf32, #tpu.memory_space<smem>>
    %c3 = arith.constant 3 : index
    %3 = memref.load %arg1[%c3] : memref<5xf32, #tpu.memory_space<smem>>
    %c4 = arith.constant 4 : index
    %4 = memref.load %arg1[%c4] : memref<5xf32, #tpu.memory_space<smem>>
    %c0_0 = arith.constant 0 : index
    %c0_1 = arith.constant 0 : index
    %c0_2 = arith.constant 0 : index
    %5 = vector.load %arg2[%c0_0, %c0_1, %c0_2] : memref<4x8x128xf32, #tpu.memory_space<vmem>>, vector<1x8x128xf32>
    %6 = vector.shape_cast %5 : vector<1x8x128xf32> to vector<8x128xf32>
    %c1_3 = arith.constant 1 : index
    %c0_4 = arith.constant 0 : index
    %c0_5 = arith.constant 0 : index
    %7 = vector.load %arg2[%c1_3, %c0_4, %c0_5] : memref<4x8x128xf32, #tpu.memory_space<vmem>>, vector<1x8x128xf32>
    %8 = vector.shape_cast %7 : vector<1x8x128xf32> to vector<8x128xf32>
    %c2_6 = arith.constant 2 : index
    %c0_7 = arith.constant 0 : index
    %c0_8 = arith.constant 0 : index
    %9 = vector.load %arg2[%c2_6, %c0_7, %c0_8] : memref<4x8x128xf32, #tpu.memory_space<vmem>>, vector<1x8x128xf32>
    %10 = vector.shape_cast %9 : vector<1x8x128xf32> to vector<8x128xf32>
    %c3_9 = arith.constant 3 : index
    %c0_10 = arith.constant 0 : index
    %c0_11 = arith.constant 0 : index
    %11 = vector.load %arg2[%c3_9, %c0_10, %c0_11] : memref<4x8x128xf32, #tpu.memory_space<vmem>>, vector<1x8x128xf32>
    %12 = vector.shape_cast %11 : vector<1x8x128xf32> to vector<8x128xf32>
    %13 = vector.broadcast %1 : f32 to vector<8x128xf32>
    %14 = arith.mulf %8, %13 : vector<8x128xf32>
    %15 = vector.broadcast %0 : f32 to vector<8x128xf32>
    %16 = arith.addf %15, %14 : vector<8x128xf32>
    %17 = arith.mulf %8, %12 : vector<8x128xf32>
    %18 = vector.broadcast %3 : f32 to vector<8x128xf32>
    %19 = arith.mulf %17, %18 : vector<8x128xf32>
    %20 = arith.addf %16, %19 : vector<8x128xf32>
    %21 = vector.broadcast %4 : f32 to vector<8x128xf32>
    %22 = arith.mulf %8, %21 : vector<8x128xf32>
    %23 = arith.mulf %22, %22 : vector<8x128xf32>
    %24 = arith.divf %20, %10 : vector<8x128xf32>
    %25 = arith.mulf %23, %23 : vector<8x128xf32>
    %cst = arith.constant 1.000000e+00 : f32
    %26 = vector.broadcast %cst : f32 to vector<8x128xf32>
    %27 = arith.subf %26, %25 : vector<8x128xf32>
    %28 = arith.mulf %24, %24 : vector<8x128xf32>
    %29 = arith.subf %27, %28 : vector<8x128xf32>
    %30 = vector.broadcast %2 : f32 to vector<8x128xf32>
    %31 = arith.mulf %30, %29 : vector<8x128xf32>
    %cst_12 = arith.constant 1.000000e-01 : f32
    %32 = vector.broadcast %cst_12 : f32 to vector<8x128xf32>
    %33 = arith.mulf %31, %32 : vector<8x128xf32>
    %34 = arith.addf %8, %33 : vector<8x128xf32>
    %cst_13 = arith.constant 1.000000e-01 : f32
    %35 = vector.broadcast %cst_13 : f32 to vector<8x128xf32>
    %36 = arith.mulf %34, %35 : vector<8x128xf32>
    %37 = arith.addf %6, %36 : vector<8x128xf32>
    %c0_14 = arith.constant 0 : index
    %c0_15 = arith.constant 0 : index
    %38 = vector.load %arg3[%c0_14, %c0_15] : memref<8x128xf32, #tpu.memory_space<vmem>>, vector<8x128xf32>
    tpu.vector_store %arg3[%c0_14, %c0_15], %37 {strides = array<i32>} : memref<8x128xf32, #tpu.memory_space<vmem>>, vector<8x128xf32>,
    return
  }
  func.func @transform_0(%arg0: i32) -> i32 {
    %c0_i32 = arith.constant 0 : i32
    %c0_i32_0 = arith.constant 0 : i32
    return %c0_i32 : i32
  }
  func.func @transform_1(%arg0: i32) -> (i32, i32, i32) {
    %c0_i32 = arith.constant 0 : i32
    %c0_i32_0 = arith.constant 0 : i32
    %c0_i32_1 = arith.constant 0 : i32
    return %c0_i32, %arg0, %c0_i32_0 : i32, i32, i32
  }
  func.func @transform_2(%arg0: i32) -> (i32, i32) {
    %c0_i32 = arith.constant 0 : i32
    %c0_i32_0 = arith.constant 0 : i32
    return %arg0, %c0_i32 : i32, i32
  }
}

</mosaic_0001>

<bundles_post_ra>
// kernel: tpu_custom_call.1
= control target key start
LH: loop header
LB: loop body
LE: loop exit
PB: predicated region body
PF: predicated region fallthrough
CT: control target
= control target key end

     0   :  { %7 = vsyncpa [#allocation5], 0  ;;  %s216_s0 = inlined_call_operand.hbm [shape: f32[5], index: 0, kind: input, shape index: {}]   ;;  %s217_s1 = inlined_call_operand.hbm [shape: f32[4,8,128], index: 1, kind: input, shape index: {}]   ;;  %s218_s2 = inlined_call_operand.hbm [shape: f32[8,128], index: 2, kind: output, shape index: {}]  }
   0x1   :  { %8 = vsyncpa [#allocation3], 0 }
   0x2   :  { %9 = vsyncpa [#allocation4], 0  ;;  %s100_s11 = scalar_lea.hbm %s216_s0, 16 }
   0x3   :  { %p101_p0 = scmp.ne.s32.totalorder %s216_s0, %s100_s11  ;;  %p104_p1 = scmp.lt.u32.totalorder %s100_s11, %s216_s0 }
   0x5   :  { %p106_p2 = pnand %p104_p1, %p101_p0 }
   0x7   :  { %109 = shalt.err (!%p106_p2)
}
   0x8   :  { %s160_s16 = smov [#allocation2]   ;;  %s161_s19 = smov [#allocation6]  }
   0x9   :  { %17 = dma.hbm_to_smem %s216_s0, 16, %s160_s16, [#allocation5]  }
   0xa   :  { %s23_s20 = sshll.u32 %s161_s19, 4  ;;  %s110_s23 = scalar_lea.hbm %s217_s1, 512  ;;  %s24_s20 = int_to_ptr.vmem [resolvable:$true] %s23_s20 }
   0xb   :  { %p111_p3 = scmp.ne.s32.totalorder %s217_s1, %s110_s23  ;;  %p114_p4 = scmp.lt.u32.totalorder %s110_s23, %s217_s1 }
   0xd   :  { %p116_p5 = pnand %p114_p4, %p111_p3 }
   0xf   :  { %119 = shalt.err (!%p116_p5)
}
  0x10   :  { %s120_s28 = scalar_lea.vmem %s24_s20, 512  ;;  %p125_p7 = scmp.lt.s32.totalorder %s24_s20, %s24_s20 }
  0x11   :  { %p121_p6 = scmp.ne.s32.totalorder %s24_s20, %s120_s28  ;;  %p126_p8 = scmp.lt.s32.totalorder %s120_s28, %s120_s28 }
  0x13   :  { %p127_p9 = por %p126_p8, %p125_p7 }
  0x15   :  { %p128_p10 = pnand %p127_p9, %p121_p6 }
  0x17   :  { %131 = shalt.err (!%p128_p10)
}
  0x18   :  { %s162_s0 = smov 128   ;;  %s163_s29 = smov 8  }
  0x19   :  { %29 = dma.hbm_to_vmem [thread:$0]  %s217_s1, 512, %s24_s20, [#allocation3], %s162_s0, %s162_s0, %s163_s29  }
  0x1a   :  { %154 = dma.done.wait [#allocation5], 16  }
  0x1b   :  { %155 = vsyncadd [#allocation5], 4294967280 }
  0x1c   :  { %156 = dma.done.wait [#allocation3], 512  }
  0x1d   :  { %157 = vsyncadd [#allocation3], 4294966784 }
  0x1e   :  { %36 = sfence }
  0x1f   :  { %s37_s4 = sld [smem:[#allocation2]]  ;;  %s89_s5 = sld [smem:[#allocation2 + $0x1]]  ;;  %v44_v0 = vld [vmem:[#allocation6 + $0x8] sm:$0xff]  ;;  %v46_v1 = vld [vmem:[#allocation6 + $0x10] sm:$0xff]  ;;  %v48_v2 = vld [vmem:[#allocation6 + $0x18] sm:$0xff] }
  0x20   :  { %s91_s6 = sld [smem:[#allocation2 + $0x3]]  ;;  %s92_s7 = sld [smem:[#allocation2 + $0x4]]  ;;  %98 = vrcp.f32 %v46_v1  ;;  %v53_v3 = vmul.f32 %v48_v2, %v44_v0  ;;  %v42_v24 = vld [vmem:[#allocation6] sm:$0xff] }
  0x21   :  { %s90_s8 = sld [smem:[#allocation2 + $0x2]]  ;;  %s164_s1 = smov [#allocation7]  }
  0x22   :  { %s79_s9 = sshll.u32 %s164_s1, 4  ;;  %s80_s9 = int_to_ptr.vmem [resolvable:$true] %s79_s9 }
  0x23   :  { %s132_s10 = scalar_lea.vmem %s80_s9, 128  ;;  %p137_p12 = scmp.lt.s32.totalorder %s80_s9, %s80_s9 }
  0x24   :  { %p133_p11 = scmp.ne.s32.totalorder %s80_s9, %s132_s10  ;;  %p138_p13 = scmp.lt.s32.totalorder %s132_s10, %s132_s10 }
  0x25   :  { %v49_v4 = vstv %s89_s5  ;;  %v51_v5 = vstv %s37_s4 }
  0x26   :  { %v50_v6 = vmul.f32 %v49_v4, %v44_v0  ;;  %v54_v7 = vstv %s91_s6  ;;  %v57_v9 = vstv %s92_s7  ;;  %p139_p0 = por %p138_p13, %p137_p12 }
  0x27   :  { %v55_v8 = vmul.f32 %v54_v7, %v53_v3  ;;  %v58_v11 = vmul.f32 %v57_v9, %v44_v0  ;;  %v66_v19 = vstv %s90_s8 }
  0x28   :  { %v52_v10 = vadd.f32 %v51_v5, %v50_v6  ;;  %p140_p1 = pnand %p139_p0, %p133_p11 }
  0x29   :  { %v59_v13 = vmul.f32 %v58_v11, %v58_v11 }
  0x2a   :  { %v56_v12 = vadd.f32 %v55_v8, %v52_v10  ;;  %v99_v14 = vpop.eup %98 }
  0x2b   :  { %v62_v16 = vmul.f32 %v59_v13, %v59_v13 }
  0x2c   :  { %v61_v15 = vmul.f32 %v99_v14, %v56_v12 }
  0x2d   :  { %v63_v17 = vsub.f32 1.0, %v62_v16 }
  0x2e   :  { %v64_v18 = vmul.f32 %v61_v15, %v61_v15 }
  0x30   :  { %v65_v20 = vsub.f32 %v63_v17, %v64_v18 }
  0x32   :  { %v67_v21 = vmul.f32 %v66_v19, %v65_v20 }
  0x34   :  { %v68_v22 = vmul.f32 0.1, %v67_v21 }
  0x36   :  { %v69_v23 = vadd.f32 %v68_v22, %v44_v0 }
  0x38   :  { %v70_v25 = vmul.f32 0.1, %v69_v23 }
  0x3a   :  { %v71_v26 = vadd.f32 %v70_v25, %v42_v24 }
  0x3c   :  { %72 = vst [vmem:[#allocation7] sm:$0xff] %v71_v26 }
  0x3d   :  { %143 = shalt.err (!%p140_p1)
}
  0x3e   :  { %s144_s13 = scalar_lea.hbm %s218_s2, 128 }
  0x3f   :  { %p145_p2 = scmp.ne.s32.totalorder %s218_s2, %s144_s13  ;;  %p148_p3 = scmp.lt.u32.totalorder %s144_s13, %s218_s2 }
  0x41   :  { %p150_p4 = pnand %p148_p3, %p145_p2 }
  0x43   :  { %153 = shalt.err (!%p150_p4)
}
  0x44   :  { %82 = dma.vmem_to_hbm [thread:$0]  %s80_s9, 128, %s218_s2, [#allocation4]  }
  0x45   :  { %158 = dma.done.wait [#allocation4], 128  }
  0x46   :  { %159 = vsyncadd [#allocation4], 4294967168 }
  0x47   :  { %86 = vsyncpa [#allocation3], 1 }
  0x48   :  { %87 = vsyncpa [#allocation4], 1 }
  0x49   :  { %88 = vsyncpa [#allocation5], 1 }

</bundles_post_ra>
